<compile_context>
chip_gen: v7x
topology: tpu7x:2x2x1
jax: 0.10.0
libtpu: 0.0.40
codegen_flags: <defaults>
</compile_context>

<pallas_src>
import jax
import jax.numpy as jnp
from jax.experimental import pallas as pl
from jax.experimental.pallas import tpu as pltpu


def _sqnl_kernel(x_ref, o_ref):
    x = x_ref[...]
    c = jnp.clip(x, -2.0, 2.0)
    # y = c - sign(c) * c^2 / 4  ==  c * (1 - |c| / 4)
    o_ref[...] = (c * (1.0 - jnp.abs(c) * 0.25)).astype(o_ref.dtype)


# ~4 MiB per block: amortizes the ~0.35 us/grid-step overhead (important on
# v7x's 3.2 TB/s HBM where a small block is only a couple of microseconds of
# DMA) while 2x(input+output) double buffers = 16 MiB fit the explicit 32 MiB
# VMEM budget on all generations.
_TARGET_BLOCK_BYTES = 4 * 1024 * 1024
_VMEM_LIMIT_BYTES = 32 * 1024 * 1024
# Above this size we guarantee >= 2 grid steps so v7x's two TensorCores both
# get work (no effect on correctness, no effect on v5e/v6e single-TC chips).
_MULTI_BLOCK_THRESHOLD_BYTES = 1 * 1024 * 1024


def _run_slab(slab: jax.Array) -> jax.Array:
    rows, lane = slab.shape
    itemsize = jnp.dtype(slab.dtype).itemsize
    # Sub-32-bit dtypes pack along sublanes: 8 rows f32, 16 bf16, 32 for 8-bit.
    sublane = max(8, 32 // itemsize)

    tile_rows = (_TARGET_BLOCK_BYTES // (lane * itemsize)) // sublane * sublane
    tile_rows = max(sublane, tile_rows)

    if rows <= tile_rows:
        total_bytes = rows * lane * itemsize
        if total_bytes > _MULTI_BLOCK_THRESHOLD_BYTES and rows >= 2 * sublane:
            # Split a "fits in one block" multi-MiB tensor into two blocks so
            # both v7x TensorCores stream it.
            half = pl.cdiv(rows, 2)
            cand = pl.cdiv(half, sublane) * sublane
            tile_rows = cand if cand < rows else rows
        else:
            # One block covering the full array (block == full dims is always
            # legal even when rows is not a multiple of the sublane count).
            tile_rows = rows

    n_tiles = pl.cdiv(rows, tile_rows)  # partial last block is masked by Pallas

    return pl.pallas_call(
        _sqnl_kernel,
        out_shape=jax.ShapeDtypeStruct((rows, lane), slab.dtype),
        grid_spec=pltpu.PrefetchScalarGridSpec(
            num_scalar_prefetch=0,
            grid=(n_tiles,),
            in_specs=[pl.BlockSpec((tile_rows, lane), lambda i: (i, 0))],
            out_specs=pl.BlockSpec((tile_rows, lane), lambda i: (i, 0)),
        ),
        compiler_params=pltpu.CompilerParams(
            dimension_semantics=("parallel",),
            vmem_limit_bytes=_VMEM_LIMIT_BYTES,
        ),
    )(slab)


def sqnl(x: jax.Array) -> jax.Array:
    assert jnp.issubdtype(x.dtype, jnp.floating), "SQNL expects a float input"
    orig_shape = x.shape
    total = x.size
    flat = x.reshape(-1)  # reshape of a contiguous array: no HBM copy

    # Widest lane-dense last dim that divides the element count -> no padding.
    lane = None
    for cand in (1024, 512, 256, 128):
        if total % cand == 0:
            lane = cand
            break

    if lane is not None:
        out = _run_slab(flat.reshape(total // lane, lane))
        return out.reshape(orig_shape)

    # Ragged fallback (rare for activation tensors): minimal pad to 128 lanes.
    # Pad value 0 -> SQNL(0) = 0, sliced off afterwards.
    lane = 128
    rows = pl.cdiv(total, lane)
    pad = rows * lane - total
    flat = jnp.pad(flat, (0, pad))
    out = _run_slab(flat.reshape(rows, lane))
    return out.reshape(-1)[:total].reshape(orig_shape)


def _sqnl_ref(x):
    # Pure-JAX reference for correctness check.
    return jnp.where(
        x > 2.0,
        1.0,
        jnp.where(
            x >= 0.0,
            x - x * x / 4.0,
            jnp.where(x >= -2.0, x + x * x / 4.0, -1.0),
        ),
    ).astype(x.dtype)


if __name__ == "__main__":
    key = jax.random.PRNGKey(0)

    # Primary check: NCHW activation tensor (batch=2, channels=4, 16x16).
    x = jax.random.normal(key, (2, 4, 16, 16), dtype=jnp.float32) * 2.0
    y = jax.block_until_ready(sqnl(x))
    y_ref = _sqnl_ref(x)
    assert y.shape == x.shape and y.dtype == x.dtype
    assert jnp.allclose(y, y_ref, atol=1e-6), "mismatch vs reference"

    # Secondary check: ragged element count exercises the pad fallback.
    x2 = jax.random.normal(jax.random.PRNGKey(1), (3, 100), dtype=jnp.float32) * 3.0
    y2 = jax.block_until_ready(sqnl(x2))
    assert y2.shape == x2.shape and y2.dtype == x2.dtype
    assert jnp.allclose(y2, _sqnl_ref(x2), atol=1e-6), "mismatch vs reference (ragged)"

    print("KERNEL_OK")
</pallas_src>

<mosaic_0001>
module attributes {stable_mosaic.version = 11 : i64} {
  func.func @_sqnl_kernel(%arg0: i32, %arg1: memref<2x1024xf32, #tpu.memory_space<vmem>>, %arg2: memref<2x1024xf32, #tpu.memory_space<vmem>>) attributes {dimension_semantics = [#tpu.dimension_semantics<parallel>], iteration_bounds = array<i64: 1>, scalar_prefetch = 0 : i64, scratch_operands = 0 : i64, tpu.core_type = #tpu.core_type<tc>, window_params = [{transform_indices = @transform_0, window_bounds = array<i64: 2, 1024>}, {transform_indices = @transform_1, window_bounds = array<i64: 2, 1024>}]} {
    %c0 = arith.constant 0 : index
    %c0_0 = arith.constant 0 : index
    %0 = vector.load %arg1[%c0, %c0_0] : memref<2x1024xf32, #tpu.memory_space<vmem>>, vector<2x1024xf32>
    %cst = arith.constant -2.000000e+00 : f32
    %cst_1 = arith.constant 2.000000e+00 : f32
    %1 = vector.broadcast %cst : f32 to vector<2x1024xf32>
    %2 = arith.maximumf %1, %0 : vector<2x1024xf32>
    %3 = vector.broadcast %cst_1 : f32 to vector<2x1024xf32>
    %4 = arith.minimumf %3, %2 : vector<2x1024xf32>
    %5 = math.absf %4 : vector<2x1024xf32>
    %cst_2 = arith.constant 2.500000e-01 : f32
    %6 = vector.broadcast %cst_2 : f32 to vector<2x1024xf32>
    %7 = arith.mulf %5, %6 : vector<2x1024xf32>
    %cst_3 = arith.constant 1.000000e+00 : f32
    %8 = vector.broadcast %cst_3 : f32 to vector<2x1024xf32>
    %9 = arith.subf %8, %7 : vector<2x1024xf32>
    %10 = arith.mulf %4, %9 : vector<2x1024xf32>
    %c0_4 = arith.constant 0 : index
    %c0_5 = arith.constant 0 : index
    %11 = vector.load %arg2[%c0_4, %c0_5] : memref<2x1024xf32, #tpu.memory_space<vmem>>, vector<2x1024xf32>
    tpu.vector_store %arg2[%c0_4, %c0_5], %10 {strides = array<i32>} : memref<2x1024xf32, #tpu.memory_space<vmem>>, vector<2x1024xf32>,
    return
  }
  func.func @transform_0(%arg0: i32) -> (i32, i32) {
    %c0_i32 = arith.constant 0 : i32
    %c0_i32_0 = arith.constant 0 : i32
    return %arg0, %c0_i32 : i32, i32
  }
  func.func @transform_1(%arg0: i32) -> (i32, i32) {
    %c0_i32 = arith.constant 0 : i32
    %c0_i32_0 = arith.constant 0 : i32
    return %arg0, %c0_i32 : i32, i32
  }
}

</mosaic_0001>

<bundles_post_ra>
// kernel: tpu_custom_call.1
= control target key start
LH: loop header
LB: loop body
LE: loop exit
PB: predicated region body
PF: predicated region fallthrough
CT: control target
= control target key end

     0   :  { %6 = vsyncpa [#allocation3], 0  ;;  %s140_s0 = inlined_call_operand.hbm [shape: f32[2,1024], index: 0, kind: input, shape index: {}]   ;;  %s141_s1 = inlined_call_operand.hbm [shape: f32[2,1024], index: 1, kind: output, shape index: {}]  }
   0x1   :  { %7 = vsyncpa [#allocation4], 0  ;;  %s104_s6 = smov [#allocation2]   ;;  %s56_s10 = scalar_lea.hbm %s140_s0, 256 }
   0x2   :  { %s14_s7 = sshll.u32 %s104_s6, 4  ;;  %p57_p0 = scmp.ne.s32.totalorder %s140_s0, %s56_s10  ;;  %s15_s7 = int_to_ptr.vmem [resolvable:$true] %s14_s7 }
   0x3   :  { %p60_p1 = scmp.lt.u32.totalorder %s56_s10, %s140_s0 }
   0x5   :  { %p62_p2 = pnand %p60_p1, %p57_p0 }
   0x7   :  { %65 = shalt.err (!%p62_p2)
}
   0x8   :  { %s66_s15 = scalar_lea.vmem %s15_s7, 256  ;;  %p71_p4 = scmp.lt.s32.totalorder %s15_s7, %s15_s7 }
   0x9   :  { %p67_p3 = scmp.ne.s32.totalorder %s15_s7, %s66_s15  ;;  %p72_p5 = scmp.lt.s32.totalorder %s66_s15, %s66_s15 }
   0xb   :  { %p73_p6 = por %p72_p5, %p71_p4 }
   0xd   :  { %p74_p7 = pnand %p73_p6, %p67_p3 }
   0xf   :  { %77 = shalt.err (!%p74_p7)
}
  0x10   :  { %17 = dma.hbm_to_vmem [thread:$0]  %s140_s0, 256, %s15_s7, [#allocation3]  }
  0x11   :  { %100 = dma.done.wait [#allocation3], 256  }
  0x12   :  { %101 = vsyncadd [#allocation3], 4294967040  ;;  %v21_v0 = vld [vmem:[#allocation2] sm:$0xff]  ;;  %v22_v1 = vld [vmem:[#allocation2 + $0x8] sm:$0xff]  ;;  %s105_s18 = smov [#allocation5]  }
  0x13   :  { %v52_v2 = vclamps-f32 %v21_v0, 2.0  ;;  %v53_v3 = vclamps-f32 %v22_v1, 2.0  ;;  %s43_s19 = sshll.u32 %s105_s18, 4  ;;  %s44_s19 = int_to_ptr.vmem [resolvable:$true] %s43_s19 }
  0x14   :  { %s78_s0 = scalar_lea.vmem %s44_s19, 256  ;;  %p83_p9 = scmp.lt.s32.totalorder %s44_s19, %s44_s19 }
  0x15   :  { %v27_v4 = vand.u32 2147483647, %v52_v2  ;;  %v28_v5 = vand.u32 2147483647, %v53_v3  ;;  %p79_p8 = scmp.ne.s32.totalorder %s44_s19, %s78_s0  ;;  %p84_p10 = scmp.lt.s32.totalorder %s78_s0, %s78_s0 }
  0x17   :  { %v29_v6 = vmul.f32 0.25, %v27_v4  ;;  %v30_v7 = vmul.f32 0.25, %v28_v5  ;;  %p85_p11 = por %p84_p10, %p83_p9 }
  0x19   :  { %v31_v8 = vsub.f32 1.0, %v29_v6  ;;  %v32_v9 = vsub.f32 1.0, %v30_v7  ;;  %p86_p12 = pnand %p85_p11, %p79_p8 }
  0x1b   :  { %v33_v10 = vmul.f32 %v52_v2, %v31_v8  ;;  %v34_v11 = vmul.f32 %v53_v3, %v32_v9 }
  0x1d   :  { %35 = vst [vmem:[#allocation5] sm:$0xff] %v33_v10  ;;  %36 = vst [vmem:[#allocation5 + $0x8] sm:$0xff] %v34_v11 }
  0x1e   :  { %89 = shalt.err (!%p86_p12)
}
  0x1f   :  { %s90_s22 = scalar_lea.hbm %s141_s1, 256 }
  0x20   :  { %p91_p13 = scmp.ne.s32.totalorder %s141_s1, %s90_s22  ;;  %p94_p0 = scmp.lt.u32.totalorder %s90_s22, %s141_s1 }
  0x22   :  { %p96_p1 = pnand %p94_p0, %p91_p13 }
  0x24   :  { %99 = shalt.err (!%p96_p1)
}
  0x25   :  { %46 = dma.vmem_to_hbm [thread:$0]  %s44_s19, 256, %s141_s1, [#allocation4]  }
  0x26   :  { %102 = dma.done.wait [#allocation4], 256  }
  0x27   :  { %103 = vsyncadd [#allocation4], 4294967040 }
  0x28   :  { %50 = vsyncpa [#allocation3], 1 }
  0x29   :  { %51 = vsyncpa [#allocation4], 1 }

</bundles_post_ra>
